<compile_context>
chip_gen: v5e
topology: v5e:2x2
jax: 0.10.0
libtpu: 0.0.40
codegen_flags: <defaults>
</compile_context>

<pallas_src>
import functools
import math

import jax
import jax.numpy as jnp
from jax.experimental import pallas as pl
from jax.experimental.pallas import tpu as pltpu

LANE = 128  # lane width / padded hidden & action dims


def mlp_kernel(x_ref, w1_ref, b1_ref, w2_ref, b2_ref, o_ref):
    # hidden = ReLU(x @ W1 + b1)    (bf16 x / W1, f32 accumulate + bias)
    h = jnp.dot(x_ref[...], w1_ref[...], preferred_element_type=jnp.float32)
    h = jnp.maximum(h + b1_ref[...], 0.0)
    # out = hidden @ W2 + b2        (bf16 downcast of h feeds the MXU)
    out = jnp.dot(h.astype(jnp.bfloat16), w2_ref[...],
                  preferred_element_type=jnp.float32)
    o_ref[...] = (out + b2_ref[...]).astype(o_ref.dtype)


def _round_up(x, m):
    return (x + m - 1) // m * m


@functools.partial(jax.jit, static_argnames=("n_actions", "tb_max"))
def net_forward(x, w1p, b1p, w2p, b2p, *, n_actions, tb_max=2048):
    """x: (B, obs) f32/bf16.
       w1p: (obs, 128) bf16, b1p: (1, 128) f32,
       w2p: (128, 128) bf16, b2p: (1, 128) f32  (zero-padded params).
       Returns (B, n_actions) f32."""
    B, obs = x.shape
    hp = w1p.shape[1]
    ap = w2p.shape[1]

    # Batch tile: multiple of 8, capped so double-buffered x/out tiles stay
    # small even under v7x's 32 MiB scoped-VMEM default
    # (tb=2048 -> x 64 KiB bf16 + out 1 MiB f32 per buffer).
    tb = min(tb_max, _round_up(B, 8))
    b_pad = _round_up(B, tb)
    if b_pad != B:
        x = jnp.pad(x, ((0, b_pad - B), (0, 0)))
    x = x.astype(jnp.bfloat16)

    grid = (b_pad // tb,)

    out = pl.pallas_call(
        mlp_kernel,
        out_shape=jax.ShapeDtypeStruct((b_pad, ap), jnp.float32),
        grid=grid,
        in_specs=[
            pl.BlockSpec((tb, obs), lambda i: (i, 0)),   # x tile, pipelined
            pl.BlockSpec((obs, hp), lambda i: (0, 0)),   # W1, VMEM-resident
            pl.BlockSpec((1, hp),   lambda i: (0, 0)),   # b1
            pl.BlockSpec((hp, ap),  lambda i: (0, 0)),   # W2
            pl.BlockSpec((1, ap),   lambda i: (0, 0)),   # b2
        ],
        out_specs=pl.BlockSpec((tb, ap), lambda i: (i, 0)),  # lane-dense (128)
        compiler_params=pltpu.CompilerParams(
            dimension_semantics=("parallel",),
        ),
    )(x, w1p, b1p, w2p, b2p)

    return out[:B, :n_actions]


def init_params(key, obs_size, hidden_size, n_actions):
    """PyTorch nn.Linear default init: U(-1/sqrt(fan_in), 1/sqrt(fan_in)).
       Returns unpadded f32 params (reference) laid out as (in, out)."""
    k1, k2, k3, k4 = jax.random.split(key, 4)
    bound1 = 1.0 / math.sqrt(obs_size)
    bound2 = 1.0 / math.sqrt(hidden_size)
    w1 = jax.random.uniform(k1, (obs_size, hidden_size), jnp.float32,
                            minval=-bound1, maxval=bound1)
    b1 = jax.random.uniform(k2, (hidden_size,), jnp.float32,
                            minval=-bound1, maxval=bound1)
    w2 = jax.random.uniform(k3, (hidden_size, n_actions), jnp.float32,
                            minval=-bound2, maxval=bound2)
    b2 = jax.random.uniform(k4, (n_actions,), jnp.float32,
                            minval=-bound2, maxval=bound2)
    return w1, b1, w2, b2


def pad_params(w1, b1, w2, b2, hp=LANE, ap=LANE):
    """Zero-pad hidden -> hp and actions -> ap; weights to bf16, biases f32.
       Zero padding keeps the forward pass exactly equivalent on the first
       n_actions output columns."""
    obs, h = w1.shape
    a = w2.shape[1]
    w1p = jnp.zeros((obs, hp), jnp.float32).at[:, :h].set(w1).astype(jnp.bfloat16)
    b1p = jnp.zeros((1, hp), jnp.float32).at[:, :h].set(b1[None, :])
    w2p = jnp.zeros((hp, ap), jnp.float32).at[:h, :a].set(w2).astype(jnp.bfloat16)
    b2p = jnp.zeros((1, ap), jnp.float32).at[:, :a].set(b2[None, :])
    return w1p, b1p, w2p, b2p


if __name__ == "__main__":
    key = jax.random.PRNGKey(0)
    obs_size, hidden_size, n_actions = 16, 32, 4
    batch = 8

    kx, kp = jax.random.split(key)
    x = jax.random.normal(kx, (batch, obs_size), jnp.float32)
    w1, b1, w2, b2 = init_params(kp, obs_size, hidden_size, n_actions)
    w1p, b1p, w2p, b2p = pad_params(w1, b1, w2, b2)

    out = net_forward(x, w1p, b1p, w2p, b2p, n_actions=n_actions)
    jax.block_until_ready(out)
    assert out.shape == (batch, n_actions)

    # Reference 1: mimic kernel numerics exactly (bf16 inputs/weights, f32 acc,
    # bf16 hidden downcast) -> tight tolerance.
    xb = x.astype(jnp.bfloat16)
    h_ref = jnp.maximum(
        jnp.dot(xb, w1.astype(jnp.bfloat16), preferred_element_type=jnp.float32)
        + b1[None, :], 0.0)
    ref_bf16 = (jnp.dot(h_ref.astype(jnp.bfloat16), w2.astype(jnp.bfloat16),
                        preferred_element_type=jnp.float32) + b2[None, :])
    assert jnp.allclose(out, ref_bf16, atol=1e-3, rtol=1e-3)

    # Reference 2: pure-f32 PyTorch semantics -> loose tolerance (bf16 inputs).
    ref_f32 = jnp.maximum(x @ w1 + b1[None, :], 0.0) @ w2 + b2[None, :]
    assert jnp.allclose(out, ref_f32, atol=0.1, rtol=0.1)

    print("KERNEL_OK")
</pallas_src>

<mosaic_0001>
module attributes {stable_mosaic.version = 11 : i64} {
  func.func @mlp_kernel(%arg0: i32, %arg1: memref<8x16xbf16, #tpu.memory_space<vmem>>, %arg2: memref<16x128xbf16, #tpu.memory_space<vmem>>, %arg3: memref<1x128xf32, #tpu.memory_space<vmem>>, %arg4: memref<128x128xbf16, #tpu.memory_space<vmem>>, %arg5: memref<1x128xf32, #tpu.memory_space<vmem>>, %arg6: memref<8x128xf32, #tpu.memory_space<vmem>>) attributes {dimension_semantics = [#tpu.dimension_semantics<parallel>], iteration_bounds = array<i64: 1>, scalar_prefetch = 0 : i64, scratch_operands = 0 : i64, tpu.core_type = #tpu.core_type<tc>, window_params = [{transform_indices = @transform_0, window_bounds = array<i64: 8, 16>}, {pipeline_mode = #tpu.pipeline_mode<synchronous>, transform_indices = @transform_1, window_bounds = array<i64: 16, 128>}, {pipeline_mode = #tpu.pipeline_mode<synchronous>, transform_indices = @transform_2, window_bounds = array<i64: 1, 128>}, {pipeline_mode = #tpu.pipeline_mode<synchronous>, transform_indices = @transform_3, window_bounds = array<i64: 128, 128>}, {pipeline_mode = #tpu.pipeline_mode<synchronous>, transform_indices = @transform_4, window_bounds = array<i64: 1, 128>}, {transform_indices = @transform_5, window_bounds = array<i64: 8, 128>}]} {
    %c0 = arith.constant 0 : index
    %c0_0 = arith.constant 0 : index
    %0 = vector.load %arg1[%c0, %c0_0] : memref<8x16xbf16, #tpu.memory_space<vmem>>, vector<8x16xbf16>
    %c0_1 = arith.constant 0 : index
    %c0_2 = arith.constant 0 : index
    %1 = vector.load %arg2[%c0_1, %c0_2] : memref<16x128xbf16, #tpu.memory_space<vmem>>, vector<16x128xbf16>
    %cst = arith.constant dense<0.000000e+00> : vector<8x128xf32>
    %2 = tpu.matmul %0, %1, %cst {dimension_numbers = #tpu.dot_dimension_numbers<[1], [0], [0], [1], [0, 0, 1, 1], [], []>} : vector<8x16xbf16>, vector<16x128xbf16>, vector<8x128xf32> -> vector<8x128xf32>
    %c0_3 = arith.constant 0 : index
    %c0_4 = arith.constant 0 : index
    %3 = vector.load %arg3[%c0_3, %c0_4] : memref<1x128xf32, #tpu.memory_space<vmem>>, vector<1x128xf32>
    %4 = vector.broadcast %3 : vector<1x128xf32> to vector<8x128xf32>
    %5 = arith.addf %2, %4 : vector<8x128xf32>
    %cst_5 = arith.constant 0.000000e+00 : f32
    %6 = vector.broadcast %cst_5 : f32 to vector<8x128xf32>
    %7 = arith.maximumf %5, %6 : vector<8x128xf32>
    %8 = arith.truncf %7 : vector<8x128xf32> to vector<8x128xbf16>
    %c0_6 = arith.constant 0 : index
    %c0_7 = arith.constant 0 : index
    %9 = vector.load %arg4[%c0_6, %c0_7] : memref<128x128xbf16, #tpu.memory_space<vmem>>, vector<128x128xbf16>
    %cst_8 = arith.constant dense<0.000000e+00> : vector<8x128xf32>
    %10 = tpu.matmul %8, %9, %cst_8 {dimension_numbers = #tpu.dot_dimension_numbers<[1], [0], [0], [1], [0, 0, 1, 1], [], []>} : vector<8x128xbf16>, vector<128x128xbf16>, vector<8x128xf32> -> vector<8x128xf32>
    %c0_9 = arith.constant 0 : index
    %c0_10 = arith.constant 0 : index
    %11 = vector.load %arg5[%c0_9, %c0_10] : memref<1x128xf32, #tpu.memory_space<vmem>>, vector<1x128xf32>
    %12 = vector.broadcast %11 : vector<1x128xf32> to vector<8x128xf32>
    %13 = arith.addf %10, %12 : vector<8x128xf32>
    %c0_11 = arith.constant 0 : index
    %c0_12 = arith.constant 0 : index
    %14 = vector.load %arg6[%c0_11, %c0_12] : memref<8x128xf32, #tpu.memory_space<vmem>>, vector<8x128xf32>
    tpu.vector_store %arg6[%c0_11, %c0_12], %13 {strides = array<i32>} : memref<8x128xf32, #tpu.memory_space<vmem>>, vector<8x128xf32>,
    return
  }
  func.func @transform_0(%arg0: i32) -> (i32, i32) {
    %c0_i32 = arith.constant 0 : i32
    %c0_i32_0 = arith.constant 0 : i32
    return %arg0, %c0_i32 : i32, i32
  }
  func.func @transform_1(%arg0: i32) -> (i32, i32) {
    %c0_i32 = arith.constant 0 : i32
    %c0_i32_0 = arith.constant 0 : i32
    %c0_i32_1 = arith.constant 0 : i32
    return %c0_i32, %c0_i32_0 : i32, i32
  }
  func.func @transform_2(%arg0: i32) -> (i32, i32) {
    %c0_i32 = arith.constant 0 : i32
    %c0_i32_0 = arith.constant 0 : i32
    %c0_i32_1 = arith.constant 0 : i32
    return %c0_i32, %c0_i32_0 : i32, i32
  }
  func.func @transform_3(%arg0: i32) -> (i32, i32) {
    %c0_i32 = arith.constant 0 : i32
    %c0_i32_0 = arith.constant 0 : i32
    %c0_i32_1 = arith.constant 0 : i32
    return %c0_i32, %c0_i32_0 : i32, i32
  }
  func.func @transform_4(%arg0: i32) -> (i32, i32) {
    %c0_i32 = arith.constant 0 : i32
    %c0_i32_0 = arith.constant 0 : i32
    %c0_i32_1 = arith.constant 0 : i32
    return %c0_i32, %c0_i32_0 : i32, i32
  }
  func.func @transform_5(%arg0: i32) -> (i32, i32) {
    %c0_i32 = arith.constant 0 : i32
    %c0_i32_0 = arith.constant 0 : i32
    return %arg0, %c0_i32 : i32, i32
  }
}

</mosaic_0001>

<bundles_post_ra>
// kernel: net_forward.1
= control target key start
LH: loop header
LB: loop body
LE: loop exit
PB: predicated region body
PF: predicated region fallthrough
CT: control target
= control target key end

     0   :  { %10 = vsyncpa [#allocation3], 0  ;;  %s233_s21 = smov [#allocation2]   ;;  %s234_s23 = smov 64   ;;  %s284_s0 = inlined_call_operand.vmem [shape: bf16[8,16], index: 0, kind: input, shape index: {}]   ;;  %s285_s1 = inlined_call_operand.vmem [shape: bf16[16,128], index: 1, kind: input, shape index: {}]   ;;  %s286_s2 = inlined_call_operand.vmem [shape: f32[1,128], index: 2, kind: input, shape index: {}]   ;;  %s287_s3 = inlined_call_operand.hbm [shape: bf16[128,128], index: 3, kind: input, shape index: {}]   ;;  %s288_s4 = inlined_call_operand.vmem [shape: f32[1,128], index: 4, kind: input, shape index: {}]   ;;  %s289_s5 = inlined_call_operand.vmem [shape: f32[8,128], index: 5, kind: output, shape index: {}]  }
   0x1   :  { %s21_s20 = sshll.u32 %s287_s3, 4  ;;  %s23_s22 = sshll.u32 %s233_s21, 4  ;;  %s22_s20 = int_to_ptr.hbm [resolvable:$true] %s21_s20  ;;  %s24_s22 = int_to_ptr.vmem [resolvable:$true] %s23_s22 }
   0x2   :  { %s235_s24 = smov 4  }
   0x3   :  { %29 = dma.hbm_to_vmem [thread:$0]  %s22_s20, 1024, %s24_s22, [#allocation3], %s234_s23, %s234_s23, %s235_s24  }
   0x4   :  { %231 = dma.done.wait [#allocation3], 1024  }
   0x5   :  { %232 = vsyncadd [#allocation3], 4294966272  ;;  %v193_v0 = vld [vmem:[%s285_s1] sm:$0xff]  ;;  %v201_v1 = vld [vmem:[#allocation2 + $0x38] sm:$0xff]  ;;  %vm50_vm0 = vcmask 130048  }
   0x6   :  { %61 = vmatpush.bf16.msra.mxu0 %v193_v0  ;;  %v37_v2 = vld [vmem:[%s284_s0] sm:$0xf]  ;;  %137 = vmatpush.bf16.msra.mxu1 %v201_v1  ;;  %v200_v3 = vld [vmem:[#allocation2 + $0x30] sm:$0xff]  ;;  %v199_v4 = vld [vmem:[#allocation2 + $0x28] sm:$0xff] }
   0x7   :  { %v198_v5 = vld [vmem:[#allocation2 + $0x20] sm:$0xff]  ;;  %v197_v6 = vld [vmem:[#allocation2 + $0x18] sm:$0xff]  ;;  %v196_v7 = vld [vmem:[#allocation2 + $0x10] sm:$0xff] }
   0x8   :  { %v195_v8 = vld [vmem:[#allocation2 + $0x8] sm:$0xff]  ;;  %v194_v9 = vld [vmem:[#allocation2] sm:$0xff] }
   0x9   :  { %160 = vmatmul.msk.bf16.vlgmr.msra.gmra.mxu0 %vm50_vm0, %v37_v2  ;;  %v205_v10 = vld [vmem:[%s286_s2] ss:$0 sm:$0xff] }
   0xa   :  { %138 = vmatpush.bf16.msra.mxu1 %v200_v3  ;;  %v206_v16 = vld [vmem:[%s288_s4] ss:$0 sm:$0xff] }
   0xe   :  { %139 = vmatpush.bf16.msra.mxu1 %v199_v4 }
  0x12   :  { %140 = vmatpush.bf16.msra.mxu1 %v198_v5 }
  0x16   :  { %141 = vmatpush.bf16.msra.mxu1 %v197_v6 }
  0x1a   :  { %142 = vmatpush.bf16.msra.mxu1 %v196_v7 }
  0x1e   :  { %143 = vmatpush.bf16.msra.mxu1 %v195_v8 }
  0x22   :  { %144 = vmatpush.bf16.msra.mxu1 %v194_v9 }
  0x86   :  { %v63_v11 = vpop.f32.mrf.mxu0 }
  0x87   :  { %v64_v12 = vadd.f32 %v205_v10, %v63_v11 }
  0x89   :  { %v67_v13 = vmax.f32 %v64_v12, 0.0 }
  0x8b   :  { %v68_v14 = vpack.c.bf16 %v67_v13, %v67_v13 }
  0x8d   :  { %145 = vmatmul.bf16.vlgmr.msra.gmra.mxu1 %v68_v14 }
  0x8e   :  { %v65_v15 = vpop.f32.mrf.mxu0 }
 0x10a   :  { %v146_v17 = vpop.f32.mrf.mxu1 }
 0x10b   :  { %v147_v18 = vadd.f32 %v206_v16, %v146_v17 }
 0x10d   :  { %150 = vst [vmem:[%s289_s5] sm:$0xff] %v147_v18 }
 0x112   :  { %v148_v19 = vpop.f32.mrf.mxu1 }
 0x113   :  { %155 = vsyncpa [#allocation3], 1 }

</bundles_post_ra>
